<compile_context>
chip_gen: v7x
topology: tpu7x:2x2x1
jax: 0.10.0
libtpu: 0.0.40
codegen_flags: <defaults>
</compile_context>

<pallas_src>
import functools

import jax
import jax.numpy as jnp
from jax.experimental import pallas as pl
from jax.experimental.pallas import tpu as pltpu

EPS = 1e-5
NEG_SLOPE = 0.01     # nn.LeakyReLU default
LANE = 128           # TPU lane width


def _round_up(x, m):
    return (x + m - 1) // m * m


def _tpu_vmem_capacity():
    # Per-TensorCore VMEM (v5e/v6e: 128 MiB, v7x: 64 MiB). Conservative
    # fallback = v7x so tile sizing is safe on every generation.
    try:
        return int(pltpu.get_tpu_info().vmem_capacity_bytes)
    except Exception:
        return 64 * 1024 * 1024


# ---------------------------------------------------------------------------
# Pass 1: per-channel batch statistics (sum, sum of squares) for BatchNorm1d.
# Grid = (N, L tiles); both outputs are VMEM-resident accumulators (their
# BlockSpecs always return block (0, 0)) -> both axes "arbitrary".
# The trailing partial lane tile is masked in-kernel (jnp.where, NaN-safe).
# ---------------------------------------------------------------------------
def _bn_stats_kernel(x_ref, s_ref, ss_ref, *, t_tile, length):
    @pl.when(jnp.logical_and(pl.program_id(0) == 0, pl.program_id(1) == 0))
    def _init():
        s_ref[...] = jnp.zeros_like(s_ref)
        ss_ref[...] = jnp.zeros_like(ss_ref)

    pos = (pl.program_id(1) * t_tile
           + jax.lax.broadcasted_iota(jnp.int32, (1, t_tile), 1))
    x = jnp.where(pos < length, x_ref[...], 0.0)          # (C, T)
    s_ref[...] += jnp.sum(x, axis=-1, keepdims=True)
    ss_ref[...] += jnp.sum(x * x, axis=-1, keepdims=True)


def _bn_channel_stats(x, vmem_limit):
    n, c, l = x.shape
    t_tile = int(min(8192, _round_up(l, LANE)))
    num_j = pl.cdiv(l, t_tile)
    kernel = functools.partial(_bn_stats_kernel, t_tile=t_tile, length=l)
    s, ss = pl.pallas_call(
        kernel,
        out_shape=(jax.ShapeDtypeStruct((c, 1), jnp.float32),
                   jax.ShapeDtypeStruct((c, 1), jnp.float32)),
        grid=(n, num_j),
        in_specs=[pl.BlockSpec((None, c, t_tile), lambda i, j: (i, 0, j))],
        out_specs=(pl.BlockSpec((c, 1), lambda i, j: (0, 0)),
                   pl.BlockSpec((c, 1), lambda i, j: (0, 0))),
        compiler_params=pltpu.CompilerParams(
            dimension_semantics=("arbitrary", "arbitrary"),
            vmem_limit_bytes=vmem_limit),
    )(x)
    return s[:, 0], ss[:, 0]


# ---------------------------------------------------------------------------
# Pass 2: fused (BN-folded) Conv1d + LeakyReLU.
#   xm_ref: (C, T)        main input tile, input positions [j*T, (j+1)*T)
#   xh_ref: (C, 128)      left halo, input positions [j*T-128, j*T)
#   w_ref:  (size, O, C)  BN-scale-folded per-tap weights
#   p_ref:  (O, size+1)   col 0 = conv bias, cols 1..size = w[:,:,k] . shift
#   o_ref:  (O, T)        lane-dense output tile
# Conv zero padding, the j==0 halo clamp and any OOB input lanes are all
# handled by one position mask; the BN-shift contribution of each tap uses the
# same mask, so borders need no special-casing.
# ---------------------------------------------------------------------------
def _conv_lrelu_kernel(xm_ref, xh_ref, w_ref, p_ref, o_ref, *,
                       size, pad, t_out, length):
    base = pl.program_id(1) * t_out                       # output pos of lane 0
    xfull = jnp.concatenate([xh_ref[...], xm_ref[...]], axis=-1)   # (C, 128+T)
    pos = (base - LANE
           + jax.lax.broadcasted_iota(jnp.int32, (1, LANE + t_out), 1))
    valid = jnp.logical_and(pos >= 0, pos < length)       # (1, 128+T)

    acc = jnp.zeros((w_ref.shape[1], t_out), jnp.float32)
    for k in range(size):                                 # static unroll
        off = LANE - pad + k
        mk = valid[:, off:off + t_out]                    # (1, T)
        win = jnp.where(mk, xfull[:, off:off + t_out], 0.0)
        acc = acc + jnp.dot(w_ref[k], win, preferred_element_type=jnp.float32)
        # BN-shift contribution of taps that land on real (non-padded) input.
        acc = acc + p_ref[:, k + 1:k + 2] * mk.astype(jnp.float32)
    y = acc + p_ref[:, 0:1]                               # conv bias
    o_ref[...] = jnp.where(y > 0, y, NEG_SLOPE * y).astype(o_ref.dtype)


def conv_module(x, w, b, gamma, beta, *, size=3, bn_on=True):
    """Pallas forward of the PyTorch Conv module. x: (N, C, L) f32."""
    x = x.astype(jnp.float32)
    n, c, l = x.shape
    o = w.shape[0]
    pad = size                                  # module sets padding = size
    l_out = l + 2 * pad - size + 1

    # ---- per-generation VMEM budget & lane-dense tiling ---------------------
    vmem_cap = _tpu_vmem_capacity()
    vmem_limit = int(min(vmem_cap // 2, 96 * 1024 * 1024))
    per_lane = 2 * 4 * (c + o)                  # double-buffered f32 in+out / lane
    t_out = min(8192, (vmem_cap // 4) // max(per_lane, 1))
    t_out = max(LANE, (t_out // LANE) * LANE)
    t_out = int(min(t_out, _round_up(l_out, LANE)))
    num_j = pl.cdiv(l_out, t_out)
    halo_blk = t_out // LANE
    max_main_blk = max(pl.cdiv(l, t_out) - 1, 0)

    # ---- BatchNorm batch statistics (Pallas reduction) + fold ---------------
    # TODO(synk): running_mean/running_var buffer updates (training side-effect
    # of nn.BatchNorm1d) are not emulated; only the forward output is produced.
    if bn_on:
        s_sum, s_sq = _bn_channel_stats(x, vmem_limit)
        cnt = jnp.float32(n * l)
        mean = s_sum / cnt
        var = jnp.maximum(s_sq / cnt - mean * mean, 0.0)   # biased (training) var
        scale = gamma.astype(jnp.float32) * jax.lax.rsqrt(var + EPS)
        shift = beta.astype(jnp.float32) - mean * scale
    else:
        scale = jnp.ones((c,), jnp.float32)
        shift = jnp.zeros((c,), jnp.float32)

    # Fold BN scale into the conv weights; per-tap layout (size, O, C).
    w_taps = jnp.transpose(w.astype(jnp.float32) * scale[None, :, None],
                           (2, 0, 1))                                  # (size, O, C)
    # Tiny per-channel params: conv bias + per-tap BN-shift dot products.
    w_shift = jnp.einsum('ock,c->ok', w.astype(jnp.float32), shift)    # (O, size)
    params = jnp.concatenate([b.astype(jnp.float32)[:, None], w_shift], axis=1)

    # ---- fused conv + LeakyReLU kernel --------------------------------------
    kernel = functools.partial(_conv_lrelu_kernel, size=size, pad=pad,
                               t_out=t_out, length=l)
    out = pl.pallas_call(
        kernel,
        out_shape=jax.ShapeDtypeStruct((n, o, l_out), jnp.float32),
        grid=(n, num_j),
        in_specs=[
            # Main input tile: positions [j*T, (j+1)*T); clamped for a fully
            # masked tail tile whose start is past L.
            pl.BlockSpec((None, c, t_out),
                         lambda i, j: (i, 0, jnp.minimum(j, max_main_blk))),
            # 128-lane left halo: positions [j*T-128, j*T); clamped (and fully
            # masked in-kernel) when j == 0.
            pl.BlockSpec((None, c, LANE),
                         lambda i, j: (i, 0, jnp.maximum(j * halo_blk - 1, 0))),
            # BN-folded per-tap weights + tiny params (whole arrays each step).
            pl.BlockSpec((size, o, c), lambda i, j: (0, 0, 0)),
            pl.BlockSpec((o, size + 1), lambda i, j: (0, 0)),
        ],
        out_specs=pl.BlockSpec((None, o, t_out), lambda i, j: (i, 0, j)),
        compiler_params=pltpu.CompilerParams(
            dimension_semantics=("parallel", "parallel"),
            vmem_limit_bytes=vmem_limit),
    )(x, x, w_taps, params)
    return out


def ref_forward(x, w, b, gamma, beta, *, size=3, bn_on=True):
    """Pure-JAX reference of the PyTorch forward pass."""
    pad = size
    if bn_on:
        mean = x.mean(axis=(0, 2), keepdims=True)
        var = ((x - mean) ** 2).mean(axis=(0, 2), keepdims=True)
        x = (x - mean) / jnp.sqrt(var + EPS) * gamma.reshape(1, -1, 1) \
            + beta.reshape(1, -1, 1)
    xp = jnp.pad(x, ((0, 0), (0, 0), (pad, pad)))
    y = jax.lax.conv_general_dilated(
        xp, w, window_strides=(1,), padding='VALID',
        dimension_numbers=('NCH', 'OIH', 'NCH'))
    y = y + b.reshape(1, -1, 1)
    return jnp.where(y > 0, y, NEG_SLOPE * y)


if __name__ == "__main__":
    # Small shapes consistent with the module: Conv1d expects (N, C, L).
    N, C_IN, C_OUT, L, SIZE = 2, 4, 8, 16, 3

    key = jax.random.PRNGKey(0)
    kx, kw, kb = jax.random.split(key, 3)

    x = jax.random.normal(kx, (N, C_IN, L), dtype=jnp.float32)
    # Deterministic parameter init (synthetic; not a checkpoint load).
    w = jax.random.normal(kw, (C_OUT, C_IN, SIZE), dtype=jnp.float32) * 0.1
    b = jax.random.normal(kb, (C_OUT,), dtype=jnp.float32) * 0.1
    gamma = jnp.ones((C_IN,), dtype=jnp.float32)   # BatchNorm1d default weight
    beta = jnp.zeros((C_IN,), dtype=jnp.float32)   # BatchNorm1d default bias

    out = conv_module(x, w, b, gamma, beta, size=SIZE, bn_on=True)
    out = jax.block_until_ready(out)

    ref = ref_forward(x, w, b, gamma, beta, size=SIZE, bn_on=True)
    assert out.shape == (N, C_OUT, L + 2 * SIZE - SIZE + 1), out.shape
    if not jnp.allclose(out, ref, atol=1e-4, rtol=1e-4):
        raise AssertionError("Pallas kernel output mismatch vs JAX reference")

    print("KERNEL_OK")
</pallas_src>

<mosaic_0001>
module attributes {stable_mosaic.version = 11 : i64} {
  func.func @_bn_stats_kernel(%arg0: i32, %arg1: i32, %arg2: memref<1x4x128xf32, #tpu.memory_space<vmem>>, %arg3: memref<4x1xf32, #tpu.memory_space<vmem>>, %arg4: memref<4x1xf32, #tpu.memory_space<vmem>>) attributes {dimension_semantics = [#tpu.dimension_semantics<arbitrary>, #tpu.dimension_semantics<arbitrary>], iteration_bounds = array<i64: 2, 1>, scalar_prefetch = 0 : i64, scratch_operands = 0 : i64, tpu.core_type = #tpu.core_type<tc>, window_params = [{transform_indices = @transform_0, window_bounds = array<i64: 1, 4, 128>}, {pipeline_mode = #tpu.pipeline_mode<synchronous>, transform_indices = @transform_1, window_bounds = array<i64: 4, 1>}, {pipeline_mode = #tpu.pipeline_mode<synchronous>, transform_indices = @transform_2, window_bounds = array<i64: 4, 1>}]} {
    %c0_i32 = arith.constant 0 : i32
    %0 = arith.cmpi eq, %arg0, %c0_i32 : i32
    %c0_i32_0 = arith.constant 0 : i32
    %1 = arith.cmpi eq, %arg1, %c0_i32_0 : i32
    %2 = arith.andi %0, %1 : i1
    %3 = arith.extui %2 : i1 to i32
    %c0_i32_1 = arith.constant 0 : i32
    %4 = arith.cmpi ne, %3, %c0_i32_1 : i32
    scf.if %4 {
      %cst_14 = arith.constant 0.000000e+00 : f32
      %28 = vector.broadcast %cst_14 : f32 to vector<4x1xf32>
      %c0_15 = arith.constant 0 : index
      %c0_16 = arith.constant 0 : index
      %29 = vector.load %arg3[%c0_15, %c0_16] : memref<4x1xf32, #tpu.memory_space<vmem>>, vector<4x1xf32>
      tpu.vector_store %arg3[%c0_15, %c0_16], %28 {strides = array<i32>} : memref<4x1xf32, #tpu.memory_space<vmem>>, vector<4x1xf32>,
      %cst_17 = arith.constant 0.000000e+00 : f32
      %30 = vector.broadcast %cst_17 : f32 to vector<4x1xf32>
      %c0_18 = arith.constant 0 : index
      %c0_19 = arith.constant 0 : index
      %31 = vector.load %arg4[%c0_18, %c0_19] : memref<4x1xf32, #tpu.memory_space<vmem>>, vector<4x1xf32>
      tpu.vector_store %arg4[%c0_18, %c0_19], %30 {strides = array<i32>} : memref<4x1xf32, #tpu.memory_space<vmem>>, vector<4x1xf32>,
    } else {
    }
    %c128_i32 = arith.constant 128 : i32
    %5 = arith.muli %arg1, %c128_i32 : i32
    %6 = tpu.iota {dimensions = array<i32: 1>} : vector<1x128xi32>
    %7 = vector.broadcast %5 : i32 to vector<1x128xi32>
    %8 = arith.addi %7, %6 : vector<1x128xi32>
    %c16_i32 = arith.constant 16 : i32
    %9 = vector.broadcast %c16_i32 : i32 to vector<1x128xi32>
    %10 = arith.cmpi slt, %8, %9 : vector<1x128xi32>
    %c0 = arith.constant 0 : index
    %c0_2 = arith.constant 0 : index
    %c0_3 = arith.constant 0 : index
    %11 = vector.load %arg2[%c0, %c0_2, %c0_3] : memref<1x4x128xf32, #tpu.memory_space<vmem>>, vector<1x4x128xf32>
    %12 = vector.shape_cast %11 : vector<1x4x128xf32> to vector<4x128xf32>
    %cst = arith.constant 0.000000e+00 : f32
    %13 = vector.shape_cast %10 : vector<1x128xi1> to vector<1x128xi1>
    %14 = vector.broadcast %13 : vector<1x128xi1> to vector<4x128xi1>
    %15 = vector.broadcast %cst : f32 to vector<4x128xf32>
    %16 = arith.select %14, %12, %15 : vector<4x128xi1>, vector<4x128xf32>
    %c0_4 = arith.constant 0 : index
    %c0_5 = arith.constant 0 : index
    %17 = vector.load %arg3[%c0_4, %c0_5] : memref<4x1xf32, #tpu.memory_space<vmem>>, vector<4x1xf32>
    %cst_6 = arith.constant dense<0.000000e+00> : vector<4xf32>
    %18 = vector.multi_reduction <add>, %16, %cst_6 [1] : vector<4x128xf32> to vector<4xf32>
    %19 = vector.shape_cast %18 : vector<4xf32> to vector<4x1xf32>
    %20 = arith.addf %17, %19 : vector<4x1xf32>
    %c0_7 = arith.constant 0 : index
    %c0_8 = arith.constant 0 : index
    %21 = vector.load %arg3[%c0_7, %c0_8] : memref<4x1xf32, #tpu.memory_space<vmem>>, vector<4x1xf32>
    tpu.vector_store %arg3[%c0_7, %c0_8], %20 {strides = array<i32>} : memref<4x1xf32, #tpu.memory_space<vmem>>, vector<4x1xf32>,
    %c0_9 = arith.constant 0 : index
    %c0_10 = arith.constant 0 : index
    %22 = vector.load %arg4[%c0_9, %c0_10] : memref<4x1xf32, #tpu.memory_space<vmem>>, vector<4x1xf32>
    %23 = arith.mulf %16, %16 : vector<4x128xf32>
    %cst_11 = arith.constant dense<0.000000e+00> : vector<4xf32>
    %24 = vector.multi_reduction <add>, %23, %cst_11 [1] : vector<4x128xf32> to vector<4xf32>
    %25 = vector.shape_cast %24 : vector<4xf32> to vector<4x1xf32>
    %26 = arith.addf %22, %25 : vector<4x1xf32>
    %c0_12 = arith.constant 0 : index
    %c0_13 = arith.constant 0 : index
    %27 = vector.load %arg4[%c0_12, %c0_13] : memref<4x1xf32, #tpu.memory_space<vmem>>, vector<4x1xf32>
    tpu.vector_store %arg4[%c0_12, %c0_13], %26 {strides = array<i32>} : memref<4x1xf32, #tpu.memory_space<vmem>>, vector<4x1xf32>,
    return
  }
  func.func @transform_0(%arg0: i32, %arg1: i32) -> (i32, i32, i32) {
    %c0_i32 = arith.constant 0 : i32
    %c0_i32_0 = arith.constant 0 : i32
    return %arg0, %c0_i32, %arg1 : i32, i32, i32
  }
  func.func @transform_1(%arg0: i32, %arg1: i32) -> (i32, i32) {
    %c0_i32 = arith.constant 0 : i32
    %c0_i32_0 = arith.constant 0 : i32
    %c0_i32_1 = arith.constant 0 : i32
    return %c0_i32, %c0_i32_0 : i32, i32
  }
  func.func @transform_2(%arg0: i32, %arg1: i32) -> (i32, i32) {
    %c0_i32 = arith.constant 0 : i32
    %c0_i32_0 = arith.constant 0 : i32
    %c0_i32_1 = arith.constant 0 : i32
    return %c0_i32, %c0_i32_0 : i32, i32
  }
}

</mosaic_0001>

<bundles_post_ra>
// kernel: tpu_custom_call.1
= control target key start
LH: loop header
LB: loop body
LE: loop exit
PB: predicated region body
PF: predicated region fallthrough
CT: control target
= control target key end

     0   :  { %8 = vsyncpa [#allocation3], 0  ;;  %s553_s0 = inlined_call_operand.hbm [shape: f32[2,4,16], index: 0, kind: input, shape index: {}]   ;;  %s554_s1 = inlined_call_operand.vmem [shape: f32[4,1], index: 1, kind: output, shape index: {0}]   ;;  %s555_s2 = inlined_call_operand.vmem [shape: f32[4,1], index: 2, kind: output, shape index: {1}]  }
   0x1   :  { %10 = vsyncpa [#allocation3 + $0x1], 0  ;;  %s414_s9 = smov 0   ;;  %s416_s10 = smov 0  }
   0x2   :  { %s418_s11 = smov 0   ;;  %s420_s12 = smov 0  }
   0x3   :  { %s422_s13 = smov 0   ;;  %s424_s14 = smov 0  }
   0x4 LB: > { %s248_s15 = sadd.s32 4294967295, %s395_s14   ;;  %s28_s16 = sadd.s32 1, %s391_s13  ;;  %s395_s14 = sphi %s424_s14, %s16_s14   ;;  %s391_s13 = sphi %s422_s13, %s565_s13   ;;  %s387_s12 = sphi %s420_s12, %s564_s12   ;;  %s383_s11 = sphi %s418_s11, %s563_s11   ;;  %s379_s10 = sphi %s416_s10, %s562_s10   ;;  %s375_s9 = sphi %s414_s9, %s561_s9  }
   0x5   : > { %p30_p0 = scmp.ge.s32.totalorder %s28_s16, 2  ;;  %s37_s17 = sadd.s32 1, %s383_s11 }
   0x6   : > { %p44_p1 = scmp.ne.s32.totalorder %s383_s11, %s379_s10  ;;  %p45_p2 = scmp.eq.s32.totalorder %s395_s14, 0 }
   0x7   : > { %s567_s16 = smov (%p30_p0, %s28_s16), 0  ;;  %p50_p4 = scmp.ne.s32.totalorder %s379_s10, %s375_s9 }
   0x8   : > { %p450_p3 = por %p45_p2, %p44_p1  ;;  %s32_s19 = ssub.s32 %s391_s13, %s567_s16 }
   0x9   : > { %p51_p5 = scmp.eq.s32.totalorder %s248_s15, 0  ;;  %p35_p6 = scmp.eq.s32.totalorder %s32_s19, 0 }
   0xa   : > { %p265_p8 = scmp.lt.s32.totalorder %s395_s14, 2  ;;  %s116_s22 = sand.u32 1, %s383_s11  }
   0xb   : > { %p457_p7 = por %p51_p5, %p50_p4  ;;  %s252_s23 = sshll.u32 %s391_s13, 6 }
   0xc   : > { %s463_s21 = scalar_select %p35_p6, %s383_s11, %s37_s17  }
   0xd   : > { %s251_s24 = sshll.u32 %s116_s22, 2  ;;  %s470_s27 = scalar_lea.hbm %s553_s0, %s252_s23 }
   0xe   : > { %s120_s28 = scalar_lea.vmem [#allocation2], %s251_s24  ;;  %p474_p9 = pnand %p265_p8, %p450_p3 }
   0xf   : > { %s128_s29 = sshll.u32 %s120_s28, 4  ;;  %s117_s3 = scalar_lea.sflag [#allocation3], %s116_s22  ;;  %s478_s29 = int_to_ptr.vmem [resolvable:$true] %s128_s29 }
  0x10   : > { %s315_s4 = scalar_lea.hbm %s470_s27, 64  ;;  %p317_p13 = pneg %p474_p9 }
  0x11   : > { %p316_p12 = scmp.ne.s32.totalorder %s470_s27, %s315_s4  ;;  %s320_s7 = scalar_lea.hbm %s553_s0, 128 }
  0x12   : > { %p321_p2 = scmp.lt.u32.totalorder %s470_s27, %s553_s0  ;;  %p322_p3 = scmp.lt.u32.totalorder %s320_s7, %s315_s4 }
  0x13   : > { %p318_p0 = pnand %p317_p13, %p316_p12  ;;  %p324_p5 = scmp.lt.u32.totalorder %s315_s4, %s470_s27 }
  0x14   : > { %p323_p4 = por %p322_p3, %p321_p2 }
  0x15   : > { %p319_p1 = pneg %p318_p0 }
  0x16   : > { %p325_p6 = por %p324_p5, %p323_p4 }
  0x18   : > { %p326_p8 = pnand %p325_p6, %p319_p1 }
  0x1a   : > { %329 = shalt.err (!%p326_p8)
}
  0x1b   : > { %s330_s15 = scalar_lea.vmem %s478_s29, 64  ;;  %s397_s17 = smov [#allocation2]  }
  0x1c   : > { %p331_p12 = scmp.ne.s32.totalorder %s478_s29, %s330_s15  ;;  %s335_s18 = sshll.u32 %s397_s17, 4  ;;  %s336_s18 = int_to_ptr.vmem [resolvable:$false] %s335_s18 }
  0x1d   : > { %s337_s19 = scalar_lea.vmem %s336_s18, 128  ;;  %p338_p11 = scmp.lt.s32.totalorder %s478_s29, %s336_s18 }
  0x1e   : > { %p333_p0 = pnand %p331_p12, %p317_p13  ;;  %p339_p2 = scmp.lt.s32.totalorder %s337_s19, %s330_s15 }
  0x20   : > { %p334_p10 = pneg %p333_p0  ;;  %p340_p3 = por %p339_p2, %p338_p11 }
  0x22   : > { %p341_p4 = pnand %p340_p3, %p334_p10 }
  0x24   : > { %344 = shalt.err (!%p341_p4)
}
  0x25   : > { %264 = dma.hbm_to_vmem [thread:$0]  (!%p474_p9), %s470_s27, 64, %s478_s29, %s117_s3  }
  0x26   : > { %p559_p1 = scmp.lt.s32.totalorder %s395_s14, 3  ;;  %p560_p5 = scmp.ge.s32.totalorder %s395_s14, 1 }
  0x28   : > { %p134_p13 = pnand %p560_p5, %p559_p1 }
  0x29   : > { %s139_s22 = sand.u32 (!%p134_p13), 1, %s379_s10  }
  0x2a   : > { %137 = sbr.rel (%p134_p13) target bundleno = 215 (0xd7), region = 24  ;;  %s254_s23 = sshll.u32 (!%p134_p13), %s139_s22, 2 }
  0x2b   : > { %s140_s24 = scalar_lea.sflag (!%p134_p13), [#allocation3], %s139_s22  ;;  %s143_s25 = scalar_lea.vmem (!%p134_p13), [#allocation2], %s254_s23 }
  0x31   : > { %370 = dma.done.wait (%p457_p7), %s140_s24, 64  }
  0x32   : > { %372 = vsyncadd (%p457_p7), %s140_s24, 4294967232  ;;  %p159_p10 = scmp.eq.s32.totalorder %s387_s12, 0 }
  0x33   : > { %vm165_vm0 = vcmask (%p159_p10), 3072   ;;  %v398_v0 = vmov (%p159_p10), 0.0  }
  0x34   : > { %164 = sbr.rel (!%p159_p10) target bundleno = 59 (0x3b), region = 32  ;;  %166 = vst.msk [vmem:[%s554_s1] sm:$0xf] (%p159_p10), %vm165_vm0, %v398_v0  ;;  %167 = vst.msk [vmem:[%s555_s2] sm:$0xf] (%p159_p10), %vm165_vm0, %v398_v0 }
  0x3b PF: > { %v169_v1 = vlaneseq  ;;  %v174_v3 = vld [vmem:[%s143_s25] sm:$0xf]  ;;  %vm179_vm1 = vcmask 1043456   ;;  %vm184_vm3 = vcmask 3072  }
  0x3c   : > { %v178_v8 = vld [vmem:[%s554_s1] sm:$0xf] }
  0x3d   : > { %v170_v2 = vand.u32 127, %v169_v1  ;;  %v186_v11 = vld [vmem:[%s555_s2] sm:$0xf] }
  0x3f   : > { %vm173_vm2 = vcmp.lt.s32.totalorder %v170_v2, 16 }
  0x40   : > { %v177_v4 = vsel %vm173_vm2, %v174_v3, 0.0 }
  0x41   : > { %v180_v5 = vsel %vm179_vm1, %v177_v4, 0.0  ;;  %v187_v6 = vmul.f32 %v177_v4, %v177_v4 }
  0x42   : > { %181 = vadd.xlane.f32.xlu0 %v180_v5 }
  0x43   : > { %v188_v7 = vsel %vm179_vm1, %v187_v6, 0.0 }
  0x46   : > { %189 = vadd.xlane.f32.xlu0 %v188_v7 }
  0xcf   : > { %v182_v9 = vpop.xlane.xlu0 %181 }
  0xd0   : > { %v183_v10 = vadd.f32 %v182_v9, %v178_v8 }
  0xd2   : > { %185 = vst.msk [vmem:[%s554_s1] sm:$0xf] %vm184_vm3, %v183_v10 }
  0xd3   : > { %v190_v12 = vpop.xlane.xlu0 %189 }
  0xd4   : > { %v191_v13 = vadd.f32 %v190_v12, %v186_v11 }
  0xd6   : > { %192 = vst.msk [vmem:[%s555_s2] sm:$0xf] %vm184_vm3, %v191_v13 }
  0xd7 PF: > { %s16_s14 = sadd.s32 1, %s395_s14   ;;  %s561_s9 = smov %s379_s10 }
  0xd8   : > { %p13_p7 = scmp.ge.s32.totalorder %s16_s14, 4   ;;  %s562_s10 = smov %s383_s11 }
  0xd9   : > { %s563_s11 = smov %s463_s21  ;;  %s564_s12 = smov %s391_s13 }
  0xda   : > { %s565_s13 = smov %s567_s16  ;;  %15 = sbr.rel (!%p13_p7) target bundleno = 4 (0x4), region = 72 }
  0xe1   :  { %210 = vsyncpa [#allocation3], 1 }
  0xe2   :  { %212 = vsyncpa [#allocation3 + $0x1], 1 }

</bundles_post_ra>
